<compile_context>
chip_gen: v6e
topology: v6e:2x2x1
jax: 0.10.0
libtpu: 0.0.40
codegen_flags: <defaults>
</compile_context>

<pallas_src>
import math

import jax
import jax.numpy as jnp
from jax.experimental import pallas as pl
from jax.experimental.pallas import tpu as pltpu


def _deq_kernel(ind_ref, embed_ref, q_ref):
    # ind_ref:   (TN, 1) int32  -- tile of flattened code indices
    # embed_ref: (K,  C) float  -- full codebook, resident across all grid steps
    # q_ref:     (TN, C) float  -- dequantized output tile (lane-dense, C % 128 == 0)
    ind = ind_ref[...]                                            # (TN, 1)
    e = embed_ref[...]                                            # (K, C)
    tn = ind.shape[0]
    k = e.shape[0]

    # Embedding lookup as one-hot @ codebook: runs on the MXU, no dynamic
    # gather / per-row DMA needed.  Exactly one 1.0 per row -> exact result.
    k_iota = jax.lax.broadcasted_iota(jnp.int32, (tn, k), 1)      # (TN, K)
    onehot = (k_iota == ind).astype(e.dtype)                      # (TN, K)
    q_ref[...] = jnp.dot(
        onehot, e, preferred_element_type=jnp.float32
    ).astype(q_ref.dtype)


def _round_up(x, m):
    return ((x + m - 1) // m) * m


def euclidean_codebook_deq(embed_ind, embed, *, tile_n=512):
    """embed_ind: int array of any shape; embed: (K, C).
    Returns quantized of shape embed_ind.shape + (C,), dtype embed.dtype."""
    K, C = embed.shape
    idx_shape = embed_ind.shape
    N = int(math.prod(idx_shape)) if idx_shape else 1

    ind_flat = embed_ind.reshape((N,)).astype(jnp.int32)

    # Large tiles amortise the ~0.35us/step pipeline overhead and fill the MXU;
    # clamp to the (sublane-aligned) problem size and pad N up to a multiple.
    tile_n = max(8, min(_round_up(tile_n, 8), _round_up(N, 8)))
    n_pad = _round_up(N, tile_n)
    if n_pad != N:
        ind_flat = jnp.pad(ind_flat, (0, n_pad - N))   # pad with index 0 (valid)
    ind_2d = ind_flat.reshape(n_pad, 1)

    grid = (n_pad // tile_n,)

    quantized = pl.pallas_call(
        _deq_kernel,
        out_shape=jax.ShapeDtypeStruct((n_pad, C), embed.dtype),
        grid_spec=pltpu.PrefetchScalarGridSpec(
            num_scalar_prefetch=0,
            grid=grid,
            in_specs=[
                # Indices tile: tiny load compared to the matmul.
                pl.BlockSpec((tile_n, 1), lambda i: (i, 0)),
                # Full codebook, block index never changes -> stays resident.
                # (For very large K*C on v7x, K could be tiled as a reduction
                #  axis instead; not needed at these sizes.)
                pl.BlockSpec((K, C), lambda i: (0, 0)),
            ],
            out_specs=pl.BlockSpec((tile_n, C), lambda i: (i, 0)),
        ),
        compiler_params=pltpu.CompilerParams(
            dimension_semantics=("parallel",),
            vmem_limit_bytes=32 * 1024 * 1024,
        ),
    )(ind_2d, embed)

    if n_pad != N:
        quantized = quantized[:N]
    return quantized.reshape(idx_shape + (C,))


def _reference_forward(embed_ind, embed):
    # Pure-JAX mirror of F.embedding(embed_ind, embed).
    return jnp.take(embed, embed_ind, axis=0)


if __name__ == "__main__":
    # Module-consistent small shapes: dim=128, codebook_size=1024 (defaults),
    # index tensor of shape (batch=2, seq=8).
    B, T = 2, 8
    C, K = 128, 1024

    key = jax.random.PRNGKey(0)
    ke, ki = jax.random.split(key)
    embed = jax.random.normal(ke, (K, C), dtype=jnp.float32)  # torch.randn(codebook_size, dim)
    embed_ind = jax.random.randint(ki, (B, T), 0, K, dtype=jnp.int32)

    quantized = euclidean_codebook_deq(embed_ind, embed)
    jax.block_until_ready(quantized)

    q_ref = _reference_forward(embed_ind, embed)
    assert quantized.shape == (B, T, C)
    assert jnp.allclose(quantized, q_ref, atol=1e-5, rtol=1e-5), "dequantized mismatch"

    # Second case exercising a multi-step grid and N-padding.
    ki2 = jax.random.fold_in(ki, 1)
    embed_ind2 = jax.random.randint(ki2, (3, 77), 0, K, dtype=jnp.int32)
    quantized2 = euclidean_codebook_deq(embed_ind2, embed, tile_n=64)
    jax.block_until_ready(quantized2)
    assert jnp.allclose(quantized2, _reference_forward(embed_ind2, embed),
                        atol=1e-5, rtol=1e-5), "dequantized mismatch (padded case)"

    print("KERNEL_OK")
</pallas_src>

<mosaic_0001>
module attributes {stable_mosaic.version = 11 : i64} {
  func.func @_deq_kernel(%arg0: i32, %arg1: memref<16x1xi32, #tpu.memory_space<vmem>>, %arg2: memref<1024x128xf32, #tpu.memory_space<vmem>>, %arg3: memref<16x128xf32, #tpu.memory_space<vmem>>) attributes {dimension_semantics = [#tpu.dimension_semantics<parallel>], iteration_bounds = array<i64: 1>, scalar_prefetch = 0 : i64, scratch_operands = 0 : i64, tpu.core_type = #tpu.core_type<tc>, window_params = [{transform_indices = @transform_0, window_bounds = array<i64: 16, 1>}, {pipeline_mode = #tpu.pipeline_mode<synchronous>, transform_indices = @transform_1, window_bounds = array<i64: 1024, 128>}, {transform_indices = @transform_2, window_bounds = array<i64: 16, 128>}]} {
    %c0 = arith.constant 0 : index
    %c0_0 = arith.constant 0 : index
    %0 = vector.load %arg1[%c0, %c0_0] : memref<16x1xi32, #tpu.memory_space<vmem>>, vector<16x1xi32>
    %c0_1 = arith.constant 0 : index
    %c0_2 = arith.constant 0 : index
    %1 = vector.load %arg2[%c0_1, %c0_2] : memref<1024x128xf32, #tpu.memory_space<vmem>>, vector<1024x128xf32>
    %2 = tpu.iota {dimensions = array<i32: 1>} : vector<16x1024xi32>
    %3 = vector.broadcast %0 : vector<16x1xi32> to vector<16x1024xi32>
    %4 = arith.cmpi eq, %2, %3 : vector<16x1024xi32>
    %5 = arith.extui %4 : vector<16x1024xi1> to vector<16x1024xi32>
    %6 = arith.sitofp %5 : vector<16x1024xi32> to vector<16x1024xf32>
    %cst = arith.constant dense<0.000000e+00> : vector<16x128xf32>
    %7 = tpu.matmul %6, %1, %cst {dimension_numbers = #tpu.dot_dimension_numbers<[1], [0], [0], [1], [0, 0, 1, 1], [], []>} : vector<16x1024xf32>, vector<1024x128xf32>, vector<16x128xf32> -> vector<16x128xf32>
    %c0_3 = arith.constant 0 : index
    %c0_4 = arith.constant 0 : index
    %8 = vector.load %arg3[%c0_3, %c0_4] : memref<16x128xf32, #tpu.memory_space<vmem>>, vector<16x128xf32>
    tpu.vector_store %arg3[%c0_3, %c0_4], %7 {strides = array<i32>} : memref<16x128xf32, #tpu.memory_space<vmem>>, vector<16x128xf32>,
    return
  }
  func.func @transform_0(%arg0: i32) -> (i32, i32) {
    %c0_i32 = arith.constant 0 : i32
    %c0_i32_0 = arith.constant 0 : i32
    return %arg0, %c0_i32 : i32, i32
  }
  func.func @transform_1(%arg0: i32) -> (i32, i32) {
    %c0_i32 = arith.constant 0 : i32
    %c0_i32_0 = arith.constant 0 : i32
    %c0_i32_1 = arith.constant 0 : i32
    return %c0_i32, %c0_i32_0 : i32, i32
  }
  func.func @transform_2(%arg0: i32) -> (i32, i32) {
    %c0_i32 = arith.constant 0 : i32
    %c0_i32_0 = arith.constant 0 : i32
    return %arg0, %c0_i32 : i32, i32
  }
}

</mosaic_0001>

<bundles_post_ra>
// kernel: tpu_custom_call.1
= control target key start
LH: loop header
LB: loop body
LE: loop exit
PB: predicated region body
PF: predicated region fallthrough
CT: control target
= control target key end

     0   :  { %7 = vsyncpa [#allocation3], 0  ;;  %s867_s0 = inlined_call_operand.vmem [shape: s32[16,1], index: 0, kind: input, shape index: {}]   ;;  %s868_s1 = inlined_call_operand.hbm [shape: f32[1024,128], index: 1, kind: input, shape index: {}]   ;;  %s869_s2 = inlined_call_operand.hbm [shape: f32[16,128], index: 2, kind: output, shape index: {}]  }
   0x1   :  { %8 = vsyncpa [#allocation4], 0  ;;  %s773_s9 = smov [#allocation2]  }
   0x2   :  { %s16_s10 = sshll.u32 %s773_s9, 4  ;;  %s17_s10 = int_to_ptr.vmem [resolvable:$true] %s16_s10 }
   0x3   :  { %s737_s11 = scalar_lea.vmem %s17_s10, 16384  ;;  %p742_p1 = scmp.lt.s32.totalorder %s17_s10, %s17_s10 }
   0x4   :  { %p738_p0 = scmp.ne.s32.totalorder %s17_s10, %s737_s11  ;;  %p743_p2 = scmp.lt.s32.totalorder %s737_s11, %s737_s11 }
   0x6   :  { %p744_p3 = por %p743_p2, %p742_p1 }
   0x8   :  { %p745_p4 = pnand %p744_p3, %p738_p0 }
   0xa   :  { %748 = shalt.err (!%p745_p4)
}
   0xb   :  { %s774_s12 = smov 128   ;;  %s775_s13 = smov 8  }
   0xc   :  { %22 = dma.hbm_to_vmem [thread:$0]  %s868_s1, 16384, %s17_s10, [#allocation3], %s774_s12, %s774_s12, %s775_s13  }
   0xd   :  { %769 = dma.done.wait [#allocation3], 16384  }
   0xe   :  { %770 = vsyncadd [#allocation3], 4294950912  ;;  %v776_v0 = vmov 0   ;;  %v26_v1 = vld [vmem:[%s867_s0] sm:$0xff]  ;;  %v27_v2 = vld [vmem:[%s867_s0 + $0x8] sm:$0xff]  ;;  %s778_s0 = smov [#allocation5]  }
   0xf   :  { %728 = vset.pattern.permute.xlu0 %v776_v0  ;;  %v59_v3 = vld [vmem:[#allocation2 + $0xf8] sm:$0xff]  ;;  %v58_v7 = vld [vmem:[#allocation2 + $0xf0] sm:$0xff]  ;;  %v57_v11 = vld [vmem:[#allocation2 + $0xe8] sm:$0xff]  ;;  %s526_s1 = sshll.u32 %s778_s0, 4  ;;  %s527_s1 = int_to_ptr.vmem [resolvable:$true] %s526_s1 }
  0x10   :  { %166 = vperm.xlu0 %728, %v26_v1   ;;  %570 = vmatprep.subr.mxu0 %v59_v3  ;;  %v91_v4 = vld [vmem:[#allocation2 + $0x1f8] sm:$0xff]  ;;  %v90_v8 = vld [vmem:[#allocation2 + $0x1f0] sm:$0xff]  ;;  %v89_v12 = vld [vmem:[#allocation2 + $0x1e8] sm:$0xff]  ;;  %s749_s20 = scalar_lea.vmem %s527_s1, 256  ;;  %p754_p6 = scmp.lt.s32.totalorder %s527_s1, %s527_s1 }
  0x11   :  { %v43_v5 = vld [vmem:[#allocation2 + $0x78] sm:$0xff]  ;;  %608 = vmatprep.subr.mxu1 %v91_v4  ;;  %v42_v9 = vld [vmem:[#allocation2 + $0x70] sm:$0xff]  ;;  %v41_v13 = vld [vmem:[#allocation2 + $0x68] sm:$0xff]  ;;  %p750_p5 = scmp.ne.s32.totalorder %s527_s1, %s749_s20  ;;  %p755_p7 = scmp.lt.s32.totalorder %s749_s20, %s749_s20 }
  0x12   :  { %v75_v6 = vld [vmem:[#allocation2 + $0x178] sm:$0xff]  ;;  %571 = vmatpush3.msra.mxu0 %v43_v5  ;;  %v74_v10 = vld [vmem:[#allocation2 + $0x170] sm:$0xff]  ;;  %v73_v14 = vld [vmem:[#allocation2 + $0x168] sm:$0xff]  ;;  %v156_v5 = vlaneseq }
  0x13   :  { %609 = vmatpush3.msra.mxu1 %v75_v6  ;;  %572 = vmatprep.subr.mxu0 %v58_v7  ;;  %v56_v15 = vld [vmem:[#allocation2 + $0xe0] sm:$0xff]  ;;  %v55_v19 = vld [vmem:[#allocation2 + $0xd8] sm:$0xff]  ;;  %v54_v23 = vld [vmem:[#allocation2 + $0xd0] sm:$0xff]  ;;  %p756_p8 = por %p755_p7, %p754_p6 }
  0x14   :  { %610 = vmatprep.subr.mxu1 %v90_v8  ;;  %573 = vmatpush3.msra.mxu0 %v42_v9  ;;  %v88_v16 = vld [vmem:[#allocation2 + $0x1e0] sm:$0xff]  ;;  %v87_v20 = vld [vmem:[#allocation2 + $0x1d8] sm:$0xff]  ;;  %v86_v24 = vld [vmem:[#allocation2 + $0x1d0] sm:$0xff]  ;;  %v806_v6 = vand.u32 127, %v156_v5 }
  0x15   :  { %169 = vperm.xlu0 %728, %v27_v2   ;;  %611 = vmatpush3.msra.mxu1 %v74_v10  ;;  %v40_v17 = vld [vmem:[#allocation2 + $0x60] sm:$0xff]  ;;  %v39_v21 = vld [vmem:[#allocation2 + $0x58] sm:$0xff]  ;;  %v38_v25 = vld [vmem:[#allocation2 + $0x50] sm:$0xff]  ;;  %p757_p9 = pnand %p756_p8, %p750_p5 }
  0x16   :  { %574 = vmatprep.subr.mxu0 %v57_v11  ;;  %612 = vmatprep.subr.mxu1 %v89_v12  ;;  %v72_v18 = vld [vmem:[#allocation2 + $0x160] sm:$0xff]  ;;  %v71_v22 = vld [vmem:[#allocation2 + $0x158] sm:$0xff]  ;;  %v70_v26 = vld [vmem:[#allocation2 + $0x150] sm:$0xff]  ;;  %v158_v7 = vadd.s32 128, %v806_v6  ;;  %v160_v8 = vadd.s32 384, %v806_v6  ;;  %v159_v9 = vadd.s32 256, %v806_v6 }
  0x17   :  { %575 = vmatpush3.msra.mxu0 %v41_v13  ;;  %613 = vmatpush3.msra.mxu1 %v73_v14  ;;  %v53_v27 = vld [vmem:[#allocation2 + $0xc8] sm:$0xff]  ;;  %v52_v31 = vld [vmem:[#allocation2 + $0xc0] sm:$0xff]  ;;  %v51_v35 = vld [vmem:[#allocation2 + $0xb8] sm:$0xff]  ;;  %v777_v13 = vmov 1.0  }
  0x18   :  { %576 = vmatprep.subr.mxu0 %v56_v15  ;;  %614 = vmatprep.subr.mxu1 %v88_v16  ;;  %v85_v28 = vld [vmem:[#allocation2 + $0x1c8] sm:$0xff]  ;;  %v84_v32 = vld [vmem:[#allocation2 + $0x1c0] sm:$0xff]  ;;  %v83_v36 = vld [vmem:[#allocation2 + $0x1b8] sm:$0xff] }
  0x19   :  { %577 = vmatpush3.msra.mxu0 %v40_v17  ;;  %615 = vmatpush3.msra.mxu1 %v72_v18  ;;  %v37_v29 = vld [vmem:[#allocation2 + $0x48] sm:$0xff]  ;;  %v36_v33 = vld [vmem:[#allocation2 + $0x40] sm:$0xff]  ;;  %v35_v37 = vld [vmem:[#allocation2 + $0x38] sm:$0xff] }
  0x1a   :  { %578 = vmatprep.subr.mxu0 %v55_v19  ;;  %616 = vmatprep.subr.mxu1 %v87_v20  ;;  %v69_v30 = vld [vmem:[#allocation2 + $0x148] sm:$0xff]  ;;  %v68_v34 = vld [vmem:[#allocation2 + $0x140] sm:$0xff]  ;;  %v67_v38 = vld [vmem:[#allocation2 + $0x138] sm:$0xff] }
  0x1b   :  { %579 = vmatpush3.msra.mxu0 %v39_v21  ;;  %617 = vmatpush3.msra.mxu1 %v71_v22  ;;  %v50_v39 = vld [vmem:[#allocation2 + $0xb0] sm:$0xff]  ;;  %v49_v43 = vld [vmem:[#allocation2 + $0xa8] sm:$0xff]  ;;  %v48_v47 = vld [vmem:[#allocation2 + $0xa0] sm:$0xff]  ;;  %v830_v21 = vadd.s32 640, %v806_v6 }
  0x1c   :  { %580 = vmatprep.subr.mxu0 %v54_v23  ;;  %618 = vmatprep.subr.mxu1 %v86_v24  ;;  %v82_v40 = vld [vmem:[#allocation2 + $0x1b0] sm:$0xff]  ;;  %v81_v44 = vld [vmem:[#allocation2 + $0x1a8] sm:$0xff]  ;;  %v80_v48 = vld [vmem:[#allocation2 + $0x1a0] sm:$0xff]  ;;  %v835_v24 = vadd.s32 896, %v806_v6 }
  0x1d   :  { %581 = vmatpush3.msra.mxu0 %v38_v25  ;;  %619 = vmatpush3.msra.mxu1 %v70_v26  ;;  %v34_v41 = vld [vmem:[#allocation2 + $0x30] sm:$0xff]  ;;  %v33_v45 = vld [vmem:[#allocation2 + $0x28] sm:$0xff]  ;;  %v32_v49 = vld [vmem:[#allocation2 + $0x20] sm:$0xff] }
  0x1e   :  { %582 = vmatprep.subr.mxu0 %v53_v27  ;;  %620 = vmatprep.subr.mxu1 %v85_v28  ;;  %v66_v42 = vld [vmem:[#allocation2 + $0x130] sm:$0xff]  ;;  %v65_v46 = vld [vmem:[#allocation2 + $0x128] sm:$0xff]  ;;  %v64_v50 = vld [vmem:[#allocation2 + $0x120] sm:$0xff] }
  0x1f   :  { %583 = vmatpush3.msra.mxu0 %v37_v29  ;;  %621 = vmatpush3.msra.mxu1 %v69_v30  ;;  %v47_v51 = vld [vmem:[#allocation2 + $0x98] sm:$0xff]  ;;  %v46_v55 = vld [vmem:[#allocation2 + $0x90] sm:$0xff]  ;;  %v45_v59 = vld [vmem:[#allocation2 + $0x88] sm:$0xff] }
  0x20   :  { %584 = vmatprep.subr.mxu0 %v52_v31  ;;  %622 = vmatprep.subr.mxu1 %v84_v32  ;;  %v79_v52 = vld [vmem:[#allocation2 + $0x198] sm:$0xff]  ;;  %v78_v56 = vld [vmem:[#allocation2 + $0x190] sm:$0xff]  ;;  %v77_v60 = vld [vmem:[#allocation2 + $0x188] sm:$0xff] }
  0x21   :  { %585 = vmatpush3.msra.mxu0 %v36_v33  ;;  %623 = vmatpush3.msra.mxu1 %v68_v34  ;;  %v31_v53 = vld [vmem:[#allocation2 + $0x18] sm:$0xff]  ;;  %v30_v57 = vld [vmem:[#allocation2 + $0x10] sm:$0xff]  ;;  %v29_v61 = vld [vmem:[#allocation2 + $0x8] sm:$0xff] }
  0x22   :  { %586 = vmatprep.subr.mxu0 %v51_v35  ;;  %624 = vmatprep.subr.mxu1 %v83_v36  ;;  %v63_v54 = vld [vmem:[#allocation2 + $0x118] sm:$0xff]  ;;  %v62_v58 = vld [vmem:[#allocation2 + $0x110] sm:$0xff]  ;;  %v61_v62 = vld [vmem:[#allocation2 + $0x108] sm:$0xff] }
  0x23   :  { %587 = vmatpush3.msra.mxu0 %v35_v37  ;;  %625 = vmatpush3.msra.mxu1 %v67_v38  ;;  %v44_v63 = vld [vmem:[#allocation2 + $0x80] sm:$0xff]  ;;  %v123_v3 = vld [vmem:[#allocation2 + $0x2f8] sm:$0xff]  ;;  %v122_v14 = vld [vmem:[#allocation2 + $0x2f0] sm:$0xff] }
  0x24   :  { %588 = vmatprep.subr.mxu0 %v50_v39  ;;  %626 = vmatprep.subr.mxu1 %v82_v40  ;;  %v76_v0 = vld [vmem:[#allocation2 + $0x180] sm:$0xff]  ;;  %v155_v4 = vld [vmem:[#allocation2 + $0x3f8] sm:$0xff]  ;;  %v154_v15 = vld [vmem:[#allocation2 + $0x3f0] sm:$0xff] }
  0x25   :  { %589 = vmatpush3.msra.mxu0 %v34_v41  ;;  %627 = vmatpush3.msra.mxu1 %v66_v42  ;;  %v28_v1 = vld [vmem:[#allocation2] sm:$0xff]  ;;  %v107_v11 = vld [vmem:[#allocation2 + $0x278] sm:$0xff]  ;;  %v106_v16 = vld [vmem:[#allocation2 + $0x270] sm:$0xff] }
  0x26   :  { %590 = vmatprep.subr.mxu0 %v49_v43  ;;  %628 = vmatprep.subr.mxu1 %v81_v44  ;;  %v60_v2 = vld [vmem:[#allocation2 + $0x100] sm:$0xff]  ;;  %v139_v12 = vld [vmem:[#allocation2 + $0x378] sm:$0xff]  ;;  %v138_v17 = vld [vmem:[#allocation2 + $0x370] sm:$0xff] }
  0x27   :  { %591 = vmatpush3.msra.mxu0 %v33_v45  ;;  %629 = vmatpush3.msra.mxu1 %v65_v46  ;;  %v121_v19 = vld [vmem:[#allocation2 + $0x2e8] sm:$0xff]  ;;  %v120_v25 = vld [vmem:[#allocation2 + $0x2e0] sm:$0xff]  ;;  %v119_v29 = vld [vmem:[#allocation2 + $0x2d8] sm:$0xff] }
  0x28   :  { %592 = vmatprep.subr.mxu0 %v48_v47  ;;  %630 = vmatprep.subr.mxu1 %v80_v48  ;;  %v153_v20 = vld [vmem:[#allocation2 + $0x3e8] sm:$0xff]  ;;  %v152_v26 = vld [vmem:[#allocation2 + $0x3e0] sm:$0xff]  ;;  %v151_v30 = vld [vmem:[#allocation2 + $0x3d8] sm:$0xff] }
  0x29   :  { %593 = vmatpush3.msra.mxu0 %v32_v49  ;;  %631 = vmatpush3.msra.mxu1 %v64_v50  ;;  %v105_v22 = vld [vmem:[#allocation2 + $0x268] sm:$0xff]  ;;  %v104_v27 = vld [vmem:[#allocation2 + $0x260] sm:$0xff]  ;;  %v103_v31 = vld [vmem:[#allocation2 + $0x258] sm:$0xff] }
  0x2a   :  { %594 = vmatprep.subr.mxu0 %v47_v51  ;;  %632 = vmatprep.subr.mxu1 %v79_v52  ;;  %v137_v23 = vld [vmem:[#allocation2 + $0x368] sm:$0xff]  ;;  %v136_v28 = vld [vmem:[#allocation2 + $0x360] sm:$0xff]  ;;  %v135_v32 = vld [vmem:[#allocation2 + $0x358] sm:$0xff] }
  0x2b   :  { %595 = vmatpush3.msra.mxu0 %v31_v53  ;;  %633 = vmatpush3.msra.mxu1 %v63_v54  ;;  %v118_v33 = vld [vmem:[#allocation2 + $0x2d0] sm:$0xff]  ;;  %v117_v37 = vld [vmem:[#allocation2 + $0x2c8] sm:$0xff]  ;;  %v116_v41 = vld [vmem:[#allocation2 + $0x2c0] sm:$0xff] }
  0x2c   :  { %596 = vmatprep.subr.mxu0 %v46_v55  ;;  %634 = vmatprep.subr.mxu1 %v78_v56  ;;  %v150_v34 = vld [vmem:[#allocation2 + $0x3d0] sm:$0xff]  ;;  %v149_v38 = vld [vmem:[#allocation2 + $0x3c8] sm:$0xff]  ;;  %v148_v42 = vld [vmem:[#allocation2 + $0x3c0] sm:$0xff] }
  0x2d   :  { %597 = vmatpush3.msra.mxu0 %v30_v57  ;;  %635 = vmatpush3.msra.mxu1 %v62_v58  ;;  %v102_v35 = vld [vmem:[#allocation2 + $0x250] sm:$0xff]  ;;  %v101_v39 = vld [vmem:[#allocation2 + $0x248] sm:$0xff]  ;;  %v100_v43 = vld [vmem:[#allocation2 + $0x240] sm:$0xff] }
  0x2e   :  { %598 = vmatprep.subr.mxu0 %v45_v59  ;;  %636 = vmatprep.subr.mxu1 %v77_v60  ;;  %v134_v36 = vld [vmem:[#allocation2 + $0x350] sm:$0xff]  ;;  %v133_v40 = vld [vmem:[#allocation2 + $0x348] sm:$0xff]  ;;  %v132_v44 = vld [vmem:[#allocation2 + $0x340] sm:$0xff] }
  0x2f   :  { %599 = vmatpush3.msra.mxu0 %v29_v61  ;;  %637 = vmatpush3.msra.mxu1 %v61_v62  ;;  %v115_v45 = vld [vmem:[#allocation2 + $0x2b8] sm:$0xff]  ;;  %v114_v49 = vld [vmem:[#allocation2 + $0x2b0] sm:$0xff]  ;;  %v113_v53 = vld [vmem:[#allocation2 + $0x2a8] sm:$0xff] }
  0x30   :  { %600 = vmatprep.subr.mxu0 %v44_v63  ;;  %638 = vmatprep.subr.mxu1 %v76_v0  ;;  %v147_v46 = vld [vmem:[#allocation2 + $0x3b8] sm:$0xff]  ;;  %v146_v50 = vld [vmem:[#allocation2 + $0x3b0] sm:$0xff]  ;;  %v145_v54 = vld [vmem:[#allocation2 + $0x3a8] sm:$0xff] }
  0x31   :  { %601 = vmatpush3.msra.mxu0 %v28_v1  ;;  %639 = vmatpush3.msra.mxu1 %v60_v2  ;;  %v99_v47 = vld [vmem:[#allocation2 + $0x238] sm:$0xff]  ;;  %v98_v51 = vld [vmem:[#allocation2 + $0x230] sm:$0xff]  ;;  %v97_v55 = vld [vmem:[#allocation2 + $0x228] sm:$0xff] }
  0x32   :  { %646 = vmatprep.subr.mxu0 %v123_v3  ;;  %684 = vmatprep.subr.mxu1 %v155_v4  ;;  %v131_v48 = vld [vmem:[#allocation2 + $0x338] sm:$0xff]  ;;  %v130_v52 = vld [vmem:[#allocation2 + $0x330] sm:$0xff]  ;;  %v129_v56 = vld [vmem:[#allocation2 + $0x328] sm:$0xff] }
  0x33   :  { %v112_v57 = vld [vmem:[#allocation2 + $0x2a0] sm:$0xff]  ;;  %v111_v61 = vld [vmem:[#allocation2 + $0x298] sm:$0xff]  ;;  %v110_v1 = vld [vmem:[#allocation2 + $0x290] sm:$0xff] }
  0x34   :  { %v144_v58 = vld [vmem:[#allocation2 + $0x3a0] sm:$0xff]  ;;  %v143_v62 = vld [vmem:[#allocation2 + $0x398] sm:$0xff]  ;;  %v142_v2 = vld [vmem:[#allocation2 + $0x390] sm:$0xff] }
  0x35   :  { %v96_v59 = vld [vmem:[#allocation2 + $0x220] sm:$0xff]  ;;  %v95_v63 = vld [vmem:[#allocation2 + $0x218] sm:$0xff]  ;;  %v94_v3 = vld [vmem:[#allocation2 + $0x210] sm:$0xff] }
  0x36   :  { %v128_v60 = vld [vmem:[#allocation2 + $0x320] sm:$0xff]  ;;  %v127_v0 = vld [vmem:[#allocation2 + $0x318] sm:$0xff]  ;;  %v126_v4 = vld [vmem:[#allocation2 + $0x310] sm:$0xff] }
  0x37   :  { %v109_v5 = vld [vmem:[#allocation2 + $0x288] sm:$0xff] }
  0x8b   :  { %v811_v10 = vpop.permute.xlu0 %166 }
  0x8c   :  { %vm172_vm0 = vcmp.eq.s32.totalorder %v158_v7, %v811_v10  ;;  %vm174_vm1 = vcmp.eq.s32.totalorder %v160_v8, %v811_v10  ;;  %vm171_vm2 = vcmp.eq.s32.totalorder %v806_v6, %v811_v10  ;;  %vm173_vm3 = vcmp.eq.s32.totalorder %v159_v9, %v811_v10 }
  0x8d   :  { %554 = vmatprep.mubr.msk.f32.mxu0 %vm172_vm0, %v777_v13  ;;  %558 = vmatprep.mubr.msk.f32.mxu1 %vm174_vm1, %v777_v13  ;;  %vm176_vm8 = vcmp.eq.s32.totalorder %v830_v21, %v811_v10  ;;  %vm178_vm9 = vcmp.eq.s32.totalorder %v835_v24, %v811_v10 }
  0x8e   :  { %555 = vmatmul.mubr.msk.f32.vlgmr.msra.gmra.mxu0 %vm171_vm2, %v777_v13  ;;  %559 = vmatmul.mubr.msk.f32.vlgmr.msra.gmra.mxu1 %vm173_vm3, %v777_v13 }
  0x8f   :  { %647 = vmatpush3.msra.mxu0 %v107_v11  ;;  %685 = vmatpush3.msra.mxu1 %v139_v12  ;;  %v108_v11 = vld [vmem:[#allocation2 + $0x280] sm:$0xff] }
  0x90   :  { %v822_v18 = vpop.permute.xlu0 %169  ;;  %648 = vmatprep.subr.mxu0 %v122_v14  ;;  %686 = vmatprep.subr.mxu1 %v154_v15  ;;  %v140_v12 = vld [vmem:[#allocation2 + $0x380] sm:$0xff]  ;;  %v161_v14 = vadd.s32 512, %v806_v6  ;;  %v163_v15 = vadd.s32 768, %v806_v6 }
  0x91   :  { %vm180_vm4 = vcmp.eq.s32.totalorder %v158_v7, %v822_v18  ;;  %vm182_vm5 = vcmp.eq.s32.totalorder %v160_v8, %v822_v18  ;;  %649 = vmatpush3.msra.mxu0 %v106_v16  ;;  %687 = vmatpush3.msra.mxu1 %v138_v17  ;;  %vm179_vm6 = vcmp.eq.s32.totalorder %v806_v6, %v822_v18  ;;  %v141_v7 = vld [vmem:[#allocation2 + $0x388] sm:$0xff]  ;;  %v92_v16 = vld [vmem:[#allocation2 + $0x200] sm:$0xff] }
  0x92   :  { %vm181_vm7 = vcmp.eq.s32.totalorder %v159_v9, %v822_v18  ;;  %556 = vmatprep.mubr.msk.f32.mxu0 %vm180_vm4, %v777_v13  ;;  %560 = vmatprep.mubr.msk.f32.mxu1 %vm182_vm5, %v777_v13  ;;  %v93_v8 = vld [vmem:[#allocation2 + $0x208] sm:$0xff]  ;;  %v124_v17 = vld [vmem:[#allocation2 + $0x300] sm:$0xff]  ;;  %vm175_vm10 = vcmp.eq.s32.totalorder %v161_v14, %v811_v10  ;;  %vm177_vm11 = vcmp.eq.s32.totalorder %v163_v15, %v811_v10 }
  0x93   :  { %650 = vmatprep.subr.mxu0 %v121_v19  ;;  %688 = vmatprep.subr.mxu1 %v153_v20  ;;  %v125_v9 = vld [vmem:[#allocation2 + $0x308] sm:$0xff]  ;;  %vm184_vm12 = vcmp.eq.s32.totalorder %v830_v21, %v822_v18  ;;  %vm186_vm13 = vcmp.eq.s32.totalorder %v835_v24, %v822_v18  ;;  %vm183_vm14 = vcmp.eq.s32.totalorder %v161_v14, %v822_v18 }
  0x94   :  { %557 = vmatmul.mubr.msk.f32.gmra.mxu0 %vm179_vm6, %v777_v13  ;;  %561 = vmatmul.mubr.msk.f32.gmra.mxu1 %vm181_vm7, %v777_v13  ;;  %vm185_vm15 = vcmp.eq.s32.totalorder %v163_v15, %v822_v18 }
  0x95   :  { %651 = vmatpush3.msra.mxu0 %v105_v22  ;;  %689 = vmatpush3.msra.mxu1 %v137_v23 }
  0x96   :  { %652 = vmatprep.subr.mxu0 %v120_v25  ;;  %562 = vmatprep.mubr.msk.f32.mxu0 %vm176_vm8, %v777_v13 }
  0x97   :  { %690 = vmatprep.subr.mxu1 %v152_v26  ;;  %566 = vmatprep.mubr.msk.f32.mxu1 %vm178_vm9, %v777_v13 }
  0x98   :  { %653 = vmatpush3.msra.mxu0 %v104_v27  ;;  %691 = vmatpush3.msra.mxu1 %v136_v28 }
  0x99   :  { %654 = vmatprep.subr.mxu0 %v119_v29  ;;  %692 = vmatprep.subr.mxu1 %v151_v30 }
  0x9a   :  { %655 = vmatpush3.msra.mxu0 %v103_v31  ;;  %693 = vmatpush3.msra.mxu1 %v135_v32 }
  0x9b   :  { %656 = vmatprep.subr.mxu0 %v118_v33  ;;  %694 = vmatprep.subr.mxu1 %v150_v34 }
  0x9c   :  { %657 = vmatpush3.msra.mxu0 %v102_v35  ;;  %695 = vmatpush3.msra.mxu1 %v134_v36 }
  0x9d   :  { %658 = vmatprep.subr.mxu0 %v117_v37  ;;  %696 = vmatprep.subr.mxu1 %v149_v38 }
  0x9e   :  { %659 = vmatpush3.msra.mxu0 %v101_v39  ;;  %697 = vmatpush3.msra.mxu1 %v133_v40 }
  0x9f   :  { %660 = vmatprep.subr.mxu0 %v116_v41  ;;  %698 = vmatprep.subr.mxu1 %v148_v42 }
  0xa0   :  { %661 = vmatpush3.msra.mxu0 %v100_v43  ;;  %699 = vmatpush3.msra.mxu1 %v132_v44 }
  0xa1   :  { %662 = vmatprep.subr.mxu0 %v115_v45  ;;  %700 = vmatprep.subr.mxu1 %v147_v46 }
  0xa2   :  { %663 = vmatpush3.msra.mxu0 %v99_v47  ;;  %701 = vmatpush3.msra.mxu1 %v131_v48 }
  0xa3   :  { %664 = vmatprep.subr.mxu0 %v114_v49  ;;  %702 = vmatprep.subr.mxu1 %v146_v50 }
  0xa4   :  { %665 = vmatpush3.msra.mxu0 %v98_v51  ;;  %703 = vmatpush3.msra.mxu1 %v130_v52 }
  0xa5   :  { %666 = vmatprep.subr.mxu0 %v113_v53  ;;  %704 = vmatprep.subr.mxu1 %v145_v54 }
  0xa6   :  { %667 = vmatpush3.msra.mxu0 %v97_v55  ;;  %705 = vmatpush3.msra.mxu1 %v129_v56 }
  0xa7   :  { %668 = vmatprep.subr.mxu0 %v112_v57  ;;  %706 = vmatprep.subr.mxu1 %v144_v58 }
  0xa8   :  { %669 = vmatpush3.msra.mxu0 %v96_v59  ;;  %707 = vmatpush3.msra.mxu1 %v128_v60 }
  0xa9   :  { %670 = vmatprep.subr.mxu0 %v111_v61  ;;  %708 = vmatprep.subr.mxu1 %v143_v62 }
  0xaa   :  { %671 = vmatpush3.msra.mxu0 %v95_v63  ;;  %709 = vmatpush3.msra.mxu1 %v127_v0 }
  0xab   :  { %672 = vmatprep.subr.mxu0 %v110_v1  ;;  %710 = vmatprep.subr.mxu1 %v142_v2 }
  0xac   :  { %673 = vmatpush3.msra.mxu0 %v94_v3  ;;  %711 = vmatpush3.msra.mxu1 %v126_v4 }
  0xad   :  { %674 = vmatprep.subr.mxu0 %v109_v5  ;;  %712 = vmatprep.subr.mxu1 %v141_v7 }
  0xae   :  { %675 = vmatpush3.msra.mxu0 %v93_v8  ;;  %713 = vmatpush3.msra.mxu1 %v125_v9 }
  0xaf   :  { %676 = vmatprep.subr.mxu0 %v108_v11  ;;  %714 = vmatprep.subr.mxu1 %v140_v12 }
  0xb0   :  { %677 = vmatpush3.msra.mxu0 %v92_v16  ;;  %715 = vmatpush3.msra.mxu1 %v124_v17 }
  0xb1   :  { %563 = vmatmul.mubr.msk.f32.vlgmr.msra.gmra.mxu0 %vm175_vm10, %v777_v13  ;;  %567 = vmatmul.mubr.msk.f32.vlgmr.msra.gmra.mxu1 %vm177_vm11, %v777_v13 }
  0xb2   :  { %564 = vmatprep.mubr.msk.f32.mxu0 %vm184_vm12, %v777_v13  ;;  %568 = vmatprep.mubr.msk.f32.mxu1 %vm186_vm13, %v777_v13 }
  0xb5   :  { %565 = vmatmul.mubr.msk.f32.gmra.mxu0 %vm183_vm14, %v777_v13  ;;  %569 = vmatmul.mubr.msk.f32.gmra.mxu1 %vm185_vm15, %v777_v13 }
 0x14e   :  { %v602_v6 = vpop.f32.mrf.mxu0  ;;  %v640_v10 = vpop.f32.mrf.mxu1 }
 0x150   :  { %v603_v19 = vpop.f32.mrf.mxu0  ;;  %v641_v20 = vpop.f32.mrf.mxu1 }
 0x151   :  { %v604_v25 = vadd.f32 %v603_v19, %v602_v6  ;;  %v642_v26 = vadd.f32 %v641_v20, %v640_v10 }
 0x153   :  { %v361_v31 = vadd.f32 %v642_v26, %v604_v25 }
 0x154   :  { %v605_v21 = vpop.f32.mrf.mxu0  ;;  %v643_v22 = vpop.f32.mrf.mxu1 }
 0x156   :  { %v606_v23 = vpop.f32.mrf.mxu0  ;;  %v644_v24 = vpop.f32.mrf.mxu1 }
 0x157   :  { %v607_v18 = vadd.f32 %v606_v23, %v605_v21  ;;  %v645_v32 = vadd.f32 %v644_v24, %v643_v22 }
 0x159   :  { %v366_v39 = vadd.f32 %v645_v32, %v607_v18 }
 0x171   :  { %v678_v27 = vpop.f32.mrf.mxu0  ;;  %v716_v28 = vpop.f32.mrf.mxu1 }
 0x173   :  { %v679_v29 = vpop.f32.mrf.mxu0  ;;  %v717_v30 = vpop.f32.mrf.mxu1 }
 0x174   :  { %v680_v33 = vadd.f32 %v679_v29, %v678_v27  ;;  %v718_v36 = vadd.f32 %v717_v30, %v716_v28 }
 0x175   :  { %v681_v34 = vpop.f32.mrf.mxu0  ;;  %v719_v13 = vpop.f32.mrf.mxu1 }
 0x176   :  { %v436_v35 = vadd.f32 %v680_v33, %v361_v31 }
 0x177   :  { %v682_v37 = vpop.f32.mrf.mxu0  ;;  %v720_v38 = vpop.f32.mrf.mxu1 }
 0x178   :  { %v511_v40 = vadd.f32 %v718_v36, %v436_v35  ;;  %v683_v41 = vadd.f32 %v682_v37, %v681_v34  ;;  %v721_v43 = vadd.f32 %v720_v38, %v719_v13 }
 0x17a   :  { %519 = vst [vmem:[#allocation5] sm:$0xff] %v511_v40  ;;  %v441_v42 = vadd.f32 %v683_v41, %v366_v39 }
 0x17c   :  { %v516_v44 = vadd.f32 %v721_v43, %v441_v42 }
 0x17e   :  { %520 = vst [vmem:[#allocation5 + $0x8] sm:$0xff] %v516_v44 }
 0x17f   :  { %760 = shalt.err (!%p757_p9)
}
 0x180   :  { %532 = dma.vmem_to_hbm [thread:$0]  %s527_s1, 256, %s869_s2, [#allocation4], %s774_s12, %s774_s12, %s775_s13  }
 0x181   :  { %771 = dma.done.wait [#allocation4], 256  }
 0x182   :  { %772 = vsyncadd [#allocation4], 4294967040 }
 0x183   :  { %536 = vsyncpa [#allocation3], 1 }
 0x184   :  { %537 = vsyncpa [#allocation4], 1 }

</bundles_post_ra>
